<compile_context>
chip_gen: v7x
topology: tpu7x:2x2x1
jax: 0.10.0
libtpu: 0.0.40
codegen_flags: <defaults>
</compile_context>

<pallas_src>
import jax
import jax.numpy as jnp
from jax.experimental import pallas as pl
from jax.experimental.pallas import tpu as pltpu

FEAT_IN = 784
HID = 32
OUT_DIM = 10
OUT_PAD = 128       # lane-dense output width


def _round_up(n, m):
    return (n + m - 1) // m * m


def mlp_kernel(x_ref, w1_ref, b1_ref, w2_ref, b2_ref, w3_ref, b3_ref, o_ref):
    # Cast x tile to bf16 in-kernel (VPU); all MXU dots accumulate in f32.
    x = x_ref[...].astype(jnp.bfloat16)
    # fc1 + relu
    h1 = jnp.dot(x, w1_ref[...], preferred_element_type=jnp.float32)
    h1 = jnp.maximum(h1 + b1_ref[...], 0.0)
    # fc2 + relu
    h2 = jnp.dot(h1.astype(jnp.bfloat16), w2_ref[...],
                 preferred_element_type=jnp.float32)
    h2 = jnp.maximum(h2 + b2_ref[...], 0.0)
    # fc3 (output lanes padded to 128; padded bias lanes are -1e30 so their
    # exp() contribution is exactly 0 and max() ignores them)
    logits = jnp.dot(h2.astype(jnp.bfloat16), w3_ref[...],
                     preferred_element_type=jnp.float32)
    logits = logits + b3_ref[...]
    # log_softmax over dim=1 (numerically stable, full 128 lanes — the extra
    # transcendentals are free under the DMA wait)
    m = jnp.max(logits, axis=1, keepdims=True)
    shifted = logits - m
    lse = jnp.log(jnp.sum(jnp.exp(shifted), axis=1, keepdims=True))
    o_ref[...] = (shifted - lse).astype(o_ref.dtype)


def prepare_params(w1, b1, w2, b2, w3, b3):
    """One-time weight prep: bf16 casts, (1, out) bias layout, 128-lane pad of
    the output head.  w*: (in, out) f32 (i.e. W^T of PyTorch); b*: (out,) f32."""
    bf = jnp.bfloat16
    w1_p = w1.astype(bf)                                   # (784, 32)
    b1_p = b1.reshape(1, HID).astype(jnp.float32)
    w2_p = w2.astype(bf)                                   # (32, 32)
    b2_p = b2.reshape(1, HID).astype(jnp.float32)
    w3_p = jnp.zeros((HID, OUT_PAD), bf).at[:, :OUT_DIM].set(w3.astype(bf))
    b3_p = jnp.full((1, OUT_PAD), -1e30, jnp.float32)
    b3_p = b3_p.at[0, :OUT_DIM].set(b3.reshape(-1).astype(jnp.float32))
    return (w1_p, b1_p, w2_p, b2_p, w3_p, b3_p)


def mynet_forward(x, params, *, tb_max=1024):
    """x: (B, 784) f32.  params: output of prepare_params()."""
    w1_p, b1_p, w2_p, b2_p, w3_p, b3_p = params
    B = x.shape[0]

    # Batch tile: multiple of 16, sized for DMA/VMEM (the MXU iterates over M).
    TB = min(tb_max, _round_up(B, 16))
    # Keep >=2 grid steps when the batch allows it so both v7x TCs get work.
    if B >= 32:
        TB = min(TB, _round_up(pl.cdiv(B, 2), 16))
    B_pad = _round_up(B, TB)

    # Only the batch dim is (possibly) padded; no feature-dim pad, no cast.
    x_in = x if B_pad == B else jnp.zeros((B_pad, FEAT_IN), x.dtype).at[:B].set(x)

    const2 = lambda i: (0, 0)   # weights/biases: same block every grid step
    out = pl.pallas_call(
        mlp_kernel,
        out_shape=jax.ShapeDtypeStruct((B_pad, OUT_PAD), jnp.float32),
        grid=(B_pad // TB,),
        in_specs=[
            pl.BlockSpec((TB, FEAT_IN), lambda i: (i, 0)),   # x tile (f32)
            pl.BlockSpec(w1_p.shape, const2),
            pl.BlockSpec(b1_p.shape, const2),
            pl.BlockSpec(w2_p.shape, const2),
            pl.BlockSpec(b2_p.shape, const2),
            pl.BlockSpec(w3_p.shape, const2),
            pl.BlockSpec(b3_p.shape, const2),
        ],
        out_specs=pl.BlockSpec((TB, OUT_PAD), lambda i: (i, 0)),
        compiler_params=pltpu.CompilerParams(
            dimension_semantics=("parallel",),
        ),
    )(x_in, w1_p, b1_p, w2_p, b2_p, w3_p, b3_p)
    return out[:B, :OUT_DIM]


def init_linear(key, in_features, out_features):
    # Deterministic init mimicking nn.Linear (uniform +/- 1/sqrt(fan_in)).
    kw, kb = jax.random.split(key)
    bound = 1.0 / jnp.sqrt(jnp.float32(in_features))
    # Stored as (in, out) == W^T relative to PyTorch's (out, in).
    w = jax.random.uniform(kw, (in_features, out_features), jnp.float32,
                           minval=-bound, maxval=bound)
    b = jax.random.uniform(kb, (out_features,), jnp.float32,
                           minval=-bound, maxval=bound)
    return w, b


if __name__ == "__main__":
    key = jax.random.PRNGKey(0)
    k_x, k1, k2, k3 = jax.random.split(key, 4)

    B = 8  # small demo batch; kernel tiles any B
    x = jax.random.normal(k_x, (B, 784), jnp.float32)

    w1, b1 = init_linear(k1, 784, 32)
    w2, b2 = init_linear(k2, 32, 32)
    w3, b3 = init_linear(k3, 32, 10)

    params = prepare_params(w1, b1, w2, b2, w3, b3)   # one-time prep
    out = mynet_forward(x, params)
    out = jax.block_until_ready(out)
    assert out.shape == (B, 10)

    # 1) Tight check against a reference mirroring the kernel's bf16-operand /
    #    f32-accumulate scheme.
    bf = jnp.bfloat16
    h1 = jnp.maximum(
        jnp.dot(x.astype(bf), w1.astype(bf),
                preferred_element_type=jnp.float32) + b1.reshape(1, -1), 0.0)
    h2 = jnp.maximum(
        jnp.dot(h1.astype(bf), w2.astype(bf),
                preferred_element_type=jnp.float32) + b2.reshape(1, -1), 0.0)
    logits = jnp.dot(h2.astype(bf), w3.astype(bf),
                     preferred_element_type=jnp.float32) + b3.reshape(1, -1)
    ref_bf = jax.nn.log_softmax(logits, axis=1)
    assert jnp.allclose(out, ref_bf, atol=1e-3, rtol=1e-3), float(
        jnp.max(jnp.abs(out - ref_bf)))

    # 2) Looser check against the pure-f32 PyTorch-equivalent forward, so the
    #    bf16 cast error vs. the original MyNet is bounded, not just mirrored.
    h1f = jnp.maximum(x @ w1 + b1.reshape(1, -1), 0.0)
    h2f = jnp.maximum(h1f @ w2 + b2.reshape(1, -1), 0.0)
    ref_f32 = jax.nn.log_softmax(h2f @ w3 + b3.reshape(1, -1), axis=1)
    assert jnp.allclose(out, ref_f32, atol=5e-2, rtol=5e-2), float(
        jnp.max(jnp.abs(out - ref_f32)))

    # TODO(synk): change_wm2 / closest_permutation (cvxpy + Hungarian weight
    # permutation) are offline weight-surgery utilities, not part of forward.
    print("KERNEL_OK")
</pallas_src>

<mosaic_0001>
module attributes {stable_mosaic.version = 11 : i64} {
  func.func @mlp_kernel(%arg0: i32, %arg1: memref<16x784xf32, #tpu.memory_space<vmem>>, %arg2: memref<784x32xbf16, #tpu.memory_space<vmem>>, %arg3: memref<1x32xf32, #tpu.memory_space<vmem>>, %arg4: memref<32x32xbf16, #tpu.memory_space<vmem>>, %arg5: memref<1x32xf32, #tpu.memory_space<vmem>>, %arg6: memref<32x128xbf16, #tpu.memory_space<vmem>>, %arg7: memref<1x128xf32, #tpu.memory_space<vmem>>, %arg8: memref<16x128xf32, #tpu.memory_space<vmem>>) attributes {dimension_semantics = [#tpu.dimension_semantics<parallel>], iteration_bounds = array<i64: 1>, scalar_prefetch = 0 : i64, scratch_operands = 0 : i64, tpu.core_type = #tpu.core_type<tc>, window_params = [{transform_indices = @transform_0, window_bounds = array<i64: 16, 784>}, {pipeline_mode = #tpu.pipeline_mode<synchronous>, transform_indices = @transform_1, window_bounds = array<i64: 784, 32>}, {pipeline_mode = #tpu.pipeline_mode<synchronous>, transform_indices = @transform_2, window_bounds = array<i64: 1, 32>}, {pipeline_mode = #tpu.pipeline_mode<synchronous>, transform_indices = @transform_3, window_bounds = array<i64: 32, 32>}, {pipeline_mode = #tpu.pipeline_mode<synchronous>, transform_indices = @transform_4, window_bounds = array<i64: 1, 32>}, {pipeline_mode = #tpu.pipeline_mode<synchronous>, transform_indices = @transform_5, window_bounds = array<i64: 32, 128>}, {pipeline_mode = #tpu.pipeline_mode<synchronous>, transform_indices = @transform_6, window_bounds = array<i64: 1, 128>}, {transform_indices = @transform_7, window_bounds = array<i64: 16, 128>}]} {
    %c0 = arith.constant 0 : index
    %c0_0 = arith.constant 0 : index
    %0 = vector.load %arg1[%c0, %c0_0] : memref<16x784xf32, #tpu.memory_space<vmem>>, vector<16x784xf32>
    %1 = arith.truncf %0 : vector<16x784xf32> to vector<16x784xbf16>
    %c0_1 = arith.constant 0 : index
    %c0_2 = arith.constant 0 : index
    %2 = vector.load %arg2[%c0_1, %c0_2] : memref<784x32xbf16, #tpu.memory_space<vmem>>, vector<784x32xbf16>
    %cst = arith.constant dense<0.000000e+00> : vector<16x32xf32>
    %3 = tpu.matmul %1, %2, %cst {dimension_numbers = #tpu.dot_dimension_numbers<[1], [0], [0], [1], [0, 0, 1, 1], [], []>} : vector<16x784xbf16>, vector<784x32xbf16>, vector<16x32xf32> -> vector<16x32xf32>
    %c0_3 = arith.constant 0 : index
    %c0_4 = arith.constant 0 : index
    %4 = vector.load %arg3[%c0_3, %c0_4] : memref<1x32xf32, #tpu.memory_space<vmem>>, vector<1x32xf32>
    %5 = vector.broadcast %4 : vector<1x32xf32> to vector<16x32xf32>
    %6 = arith.addf %3, %5 : vector<16x32xf32>
    %cst_5 = arith.constant 0.000000e+00 : f32
    %7 = vector.broadcast %cst_5 : f32 to vector<16x32xf32>
    %8 = arith.maximumf %6, %7 : vector<16x32xf32>
    %9 = arith.truncf %8 : vector<16x32xf32> to vector<16x32xbf16>
    %c0_6 = arith.constant 0 : index
    %c0_7 = arith.constant 0 : index
    %10 = vector.load %arg4[%c0_6, %c0_7] : memref<32x32xbf16, #tpu.memory_space<vmem>>, vector<32x32xbf16>
    %cst_8 = arith.constant dense<0.000000e+00> : vector<16x32xf32>
    %11 = tpu.matmul %9, %10, %cst_8 {dimension_numbers = #tpu.dot_dimension_numbers<[1], [0], [0], [1], [0, 0, 1, 1], [], []>} : vector<16x32xbf16>, vector<32x32xbf16>, vector<16x32xf32> -> vector<16x32xf32>
    %c0_9 = arith.constant 0 : index
    %c0_10 = arith.constant 0 : index
    %12 = vector.load %arg5[%c0_9, %c0_10] : memref<1x32xf32, #tpu.memory_space<vmem>>, vector<1x32xf32>
    %13 = vector.broadcast %12 : vector<1x32xf32> to vector<16x32xf32>
    %14 = arith.addf %11, %13 : vector<16x32xf32>
    %cst_11 = arith.constant 0.000000e+00 : f32
    %15 = vector.broadcast %cst_11 : f32 to vector<16x32xf32>
    %16 = arith.maximumf %14, %15 : vector<16x32xf32>
    %17 = arith.truncf %16 : vector<16x32xf32> to vector<16x32xbf16>
    %c0_12 = arith.constant 0 : index
    %c0_13 = arith.constant 0 : index
    %18 = vector.load %arg6[%c0_12, %c0_13] : memref<32x128xbf16, #tpu.memory_space<vmem>>, vector<32x128xbf16>
    %cst_14 = arith.constant dense<0.000000e+00> : vector<16x128xf32>
    %19 = tpu.matmul %17, %18, %cst_14 {dimension_numbers = #tpu.dot_dimension_numbers<[1], [0], [0], [1], [0, 0, 1, 1], [], []>} : vector<16x32xbf16>, vector<32x128xbf16>, vector<16x128xf32> -> vector<16x128xf32>
    %c0_15 = arith.constant 0 : index
    %c0_16 = arith.constant 0 : index
    %20 = vector.load %arg7[%c0_15, %c0_16] : memref<1x128xf32, #tpu.memory_space<vmem>>, vector<1x128xf32>
    %21 = vector.broadcast %20 : vector<1x128xf32> to vector<16x128xf32>
    %22 = arith.addf %19, %21 : vector<16x128xf32>
    %cst_17 = arith.constant dense<0xFF800000> : vector<16xf32>
    %23 = vector.multi_reduction <maximumf>, %22, %cst_17 [1] : vector<16x128xf32> to vector<16xf32>
    %24 = vector.shape_cast %23 : vector<16xf32> to vector<16x1xf32>
    %25 = vector.broadcast %24 : vector<16x1xf32> to vector<16x128xf32>
    %26 = arith.subf %22, %25 : vector<16x128xf32>
    %27 = math.exp %26 : vector<16x128xf32>
    %cst_18 = arith.constant dense<0.000000e+00> : vector<16xf32>
    %28 = vector.multi_reduction <add>, %27, %cst_18 [1] : vector<16x128xf32> to vector<16xf32>
    %29 = vector.shape_cast %28 : vector<16xf32> to vector<16x1xf32>
    %30 = math.log %29 : vector<16x1xf32>
    %31 = vector.broadcast %30 : vector<16x1xf32> to vector<16x128xf32>
    %32 = arith.subf %26, %31 : vector<16x128xf32>
    %c0_19 = arith.constant 0 : index
    %c0_20 = arith.constant 0 : index
    %33 = vector.load %arg8[%c0_19, %c0_20] : memref<16x128xf32, #tpu.memory_space<vmem>>, vector<16x128xf32>
    tpu.vector_store %arg8[%c0_19, %c0_20], %32 {strides = array<i32>} : memref<16x128xf32, #tpu.memory_space<vmem>>, vector<16x128xf32>,
    return
  }
  func.func @transform_0(%arg0: i32) -> (i32, i32) {
    %c0_i32 = arith.constant 0 : i32
    %c0_i32_0 = arith.constant 0 : i32
    return %arg0, %c0_i32 : i32, i32
  }
  func.func @transform_1(%arg0: i32) -> (i32, i32) {
    %c0_i32 = arith.constant 0 : i32
    %c0_i32_0 = arith.constant 0 : i32
    %c0_i32_1 = arith.constant 0 : i32
    return %c0_i32, %c0_i32_0 : i32, i32
  }
  func.func @transform_2(%arg0: i32) -> (i32, i32) {
    %c0_i32 = arith.constant 0 : i32
    %c0_i32_0 = arith.constant 0 : i32
    %c0_i32_1 = arith.constant 0 : i32
    return %c0_i32, %c0_i32_0 : i32, i32
  }
  func.func @transform_3(%arg0: i32) -> (i32, i32) {
    %c0_i32 = arith.constant 0 : i32
    %c0_i32_0 = arith.constant 0 : i32
    %c0_i32_1 = arith.constant 0 : i32
    return %c0_i32, %c0_i32_0 : i32, i32
  }
  func.func @transform_4(%arg0: i32) -> (i32, i32) {
    %c0_i32 = arith.constant 0 : i32
    %c0_i32_0 = arith.constant 0 : i32
    %c0_i32_1 = arith.constant 0 : i32
    return %c0_i32, %c0_i32_0 : i32, i32
  }
  func.func @transform_5(%arg0: i32) -> (i32, i32) {
    %c0_i32 = arith.constant 0 : i32
    %c0_i32_0 = arith.constant 0 : i32
    %c0_i32_1 = arith.constant 0 : i32
    return %c0_i32, %c0_i32_0 : i32, i32
  }
  func.func @transform_6(%arg0: i32) -> (i32, i32) {
    %c0_i32 = arith.constant 0 : i32
    %c0_i32_0 = arith.constant 0 : i32
    %c0_i32_1 = arith.constant 0 : i32
    return %c0_i32, %c0_i32_0 : i32, i32
  }
  func.func @transform_7(%arg0: i32) -> (i32, i32) {
    %c0_i32 = arith.constant 0 : i32
    %c0_i32_0 = arith.constant 0 : i32
    return %arg0, %c0_i32 : i32, i32
  }
}

</mosaic_0001>

<bundles_post_ra>
// kernel: tpu_custom_call.1
= control target key start
LH: loop header
LB: loop body
LE: loop exit
PB: predicated region body
PF: predicated region fallthrough
CT: control target
= control target key end

     0   :  { %v1040_v43 = vmov 0.0   ;;  %vm1041_vm0 = vmmov 0   ;;  %vm448_vm1 = vcmask 130048   ;;  %s1320_s0 = inlined_call_operand.vmem [shape: f32[16,784], index: 0, kind: input, shape index: {}]   ;;  %s1321_s1 = inlined_call_operand.vmem [shape: bf16[784,32], index: 1, kind: input, shape index: {}]   ;;  %s1322_s2 = inlined_call_operand.vmem [shape: f32[1,32], index: 2, kind: input, shape index: {}]   ;;  %s1323_s3 = inlined_call_operand.vmem [shape: bf16[32,32], index: 3, kind: input, shape index: {}]   ;;  %s1324_s4 = inlined_call_operand.vmem [shape: f32[1,32], index: 4, kind: input, shape index: {}]   ;;  %s1325_s5 = inlined_call_operand.vmem [shape: bf16[32,128], index: 5, kind: input, shape index: {}]   ;;  %s1326_s6 = inlined_call_operand.vmem [shape: f32[1,128], index: 6, kind: input, shape index: {}]   ;;  %s1327_s7 = inlined_call_operand.hbm [shape: f32[16,128], index: 7, kind: output, shape index: {}]  }
   0x1   :  { %v955_v0 = vld [vmem:[%s1321_s1 + $0x40] sm:$0xff]   ;;  %v959_v4 = vld [vmem:[%s1321_s1 + $0x48] sm:$0xff]   ;;  %v963_v8 = vld [vmem:[%s1321_s1 + $0x50] sm:$0xff]  }
   0x2   :  { %v956_v1 = vld [vmem:[%s1321_s1] sm:$0xff]   ;;  %854 = vmatprep.subr.bf16.mxu0 %v955_v0  ;;  %v960_v5 = vld [vmem:[%s1321_s1 + $0x8] sm:$0xff]   ;;  %v964_v9 = vld [vmem:[%s1321_s1 + $0x10] sm:$0xff]  }
   0x3   :  { %v957_v2 = vld [vmem:[%s1321_s1 + $0xc0] sm:$0xff]   ;;  %855 = vmatpush3.bf16.msra.mxu0 %v956_v1  ;;  %v961_v6 = vld [vmem:[%s1321_s1 + $0xc8] sm:$0xff]   ;;  %v965_v10 = vld [vmem:[%s1321_s1 + $0xd0] sm:$0xff]  }
   0x4   :  { %v958_v3 = vld [vmem:[%s1321_s1 + $0x80] sm:$0xff]   ;;  %876 = vmatprep.subr.bf16.mxu1 %v957_v2  ;;  %856 = vmatprep.subr.bf16.mxu0 %v959_v4  ;;  %v962_v7 = vld [vmem:[%s1321_s1 + $0x88] sm:$0xff]   ;;  %v966_v11 = vld [vmem:[%s1321_s1 + $0x90] sm:$0xff]  }
   0x5   :  { %877 = vmatpush3.bf16.msra.mxu1 %v958_v3  ;;  %v967_v12 = vld [vmem:[%s1321_s1 + $0x58] sm:$0xff]   ;;  %v971_v16 = vld [vmem:[%s1321_s1 + $0x60] sm:$0xff]   ;;  %v975_v20 = vld [vmem:[%s1321_s1 + $0x68] sm:$0xff]  }
   0x6   :  { %878 = vmatprep.subr.bf16.mxu1 %v961_v6  ;;  %v968_v13 = vld [vmem:[%s1321_s1 + $0x18] sm:$0xff]   ;;  %v972_v17 = vld [vmem:[%s1321_s1 + $0x20] sm:$0xff]   ;;  %v976_v21 = vld [vmem:[%s1321_s1 + $0x28] sm:$0xff]  }
   0x7   :  { %857 = vmatpush3.bf16.msra.mxu0 %v960_v5  ;;  %v969_v14 = vld [vmem:[%s1321_s1 + $0xd8] sm:$0xff]   ;;  %v973_v18 = vld [vmem:[%s1321_s1 + $0xe0] sm:$0xff]   ;;  %v977_v22 = vld [vmem:[%s1321_s1 + $0xe8] sm:$0xff]  }
   0x8   :  { %858 = vmatprep.subr.bf16.mxu0 %v963_v8  ;;  %v970_v15 = vld [vmem:[%s1321_s1 + $0x98] sm:$0xff]   ;;  %v974_v19 = vld [vmem:[%s1321_s1 + $0xa0] sm:$0xff]   ;;  %v978_v23 = vld [vmem:[%s1321_s1 + $0xa8] sm:$0xff]  }
   0x9   :  { %879 = vmatpush3.bf16.msra.mxu1 %v962_v7  ;;  %v979_v24 = vld [vmem:[%s1321_s1 + $0x70] sm:$0xff]   ;;  %v983_v28 = vld [vmem:[%s1321_s1 + $0x78] sm:$0xff]   ;;  %v29_v31 = vld [vmem:[%s1320_s0 + $0x8] sm:$0xff] }
   0xa   :  { %880 = vmatprep.subr.bf16.mxu1 %v965_v10  ;;  %v980_v25 = vld [vmem:[%s1321_s1 + $0x30] sm:$0xff]   ;;  %v984_v29 = vld [vmem:[%s1321_s1 + $0x38] sm:$0xff]   ;;  %v36_v32 = vld [vmem:[%s1320_s0 + $0x40] sm:$0xff] }
   0xb   :  { %859 = vmatpush3.bf16.msra.mxu0 %v964_v9  ;;  %v981_v26 = vld [vmem:[%s1321_s1 + $0xf0] sm:$0xff]   ;;  %v985_v30 = vld [vmem:[%s1321_s1 + $0xf8] sm:$0xff]   ;;  %v43_v33 = vpack.c.bf16 %v36_v32, %v29_v31  ;;  %v28_v35 = vld [vmem:[%s1320_s0] sm:$0xff] }
   0xc   :  { %860 = vmatprep.subr.bf16.mxu0 %v967_v12  ;;  %v982_v27 = vld [vmem:[%s1321_s1 + $0xb0] sm:$0xff]   ;;  %v986_v34 = vld [vmem:[%s1321_s1 + $0xb8] sm:$0xff]   ;;  %v987_v38 = vld [vmem:[%s1321_s1 + $0x140] sm:$0xff]  }
   0xd   :  { %881 = vmatpush3.bf16.msra.mxu1 %v966_v11  ;;  %v35_v36 = vld [vmem:[%s1320_s0 + $0x38] sm:$0xff]  ;;  %484 = vmatprep.mubr.bf16.mxu0 %v43_v33  ;;  %v38_v40 = vld [vmem:[%s1320_s0 + $0x50] sm:$0xff]  ;;  %v988_v42 = vld [vmem:[%s1321_s1 + $0x100] sm:$0xff]  }
   0xe   :  { %882 = vmatprep.subr.bf16.mxu1 %v969_v14  ;;  %v42_v37 = vpack.c.bf16 %v35_v36, %v28_v35  ;;  %v31_v39 = vld [vmem:[%s1320_s0 + $0x18] sm:$0xff]  ;;  %v30_v44 = vld [vmem:[%s1320_s0 + $0x10] sm:$0xff]  ;;  %v37_v45 = vld [vmem:[%s1320_s0 + $0x48] sm:$0xff] }
   0xf   :  { %861 = vmatpush3.bf16.msra.mxu0 %v968_v13  ;;  %v45_v41 = vpack.c.bf16 %v38_v40, %v31_v39  ;;  %v44_v46 = vpack.c.bf16 %v37_v45, %v30_v44  ;;  %v989_v47 = vld [vmem:[%s1321_s1 + $0x148] sm:$0xff]   ;;  %v991_v49 = vld [vmem:[%s1321_s1 + $0x150] sm:$0xff]   ;;  %v993_v51 = vld [vmem:[%s1321_s1 + $0x158] sm:$0xff]  }
  0x10   :  { %862 = vmatprep.subr.bf16.mxu0 %v971_v16  ;;  %v990_v48 = vld [vmem:[%s1321_s1 + $0x108] sm:$0xff]   ;;  %v992_v50 = vld [vmem:[%s1321_s1 + $0x110] sm:$0xff]   ;;  %v994_v52 = vld [vmem:[%s1321_s1 + $0x118] sm:$0xff]  }
  0x11   :  { %883 = vmatpush3.bf16.msra.mxu1 %v970_v15  ;;  %525 = vmatprep.mubr.bf16.mxu1 %v45_v41  ;;  %v995_v53 = vld [vmem:[%s1321_s1 + $0x160] sm:$0xff]   ;;  %v997_v55 = vld [vmem:[%s1321_s1 + $0x168] sm:$0xff]   ;;  %v999_v59 = vld [vmem:[%s1321_s1 + $0x170] sm:$0xff]  }
  0x12   :  { %884 = vmatprep.subr.bf16.mxu1 %v973_v18  ;;  %v996_v54 = vld [vmem:[%s1321_s1 + $0x120] sm:$0xff]   ;;  %v33_v57 = vld [vmem:[%s1320_s0 + $0x28] sm:$0xff]  ;;  %v34_v62 = vld [vmem:[%s1320_s0 + $0x30] sm:$0xff] }
  0x13   :  { %863 = vmatpush3.bf16.msra.mxu0 %v972_v17  ;;  %v1003_v56 = vld [vmem:[%s1321_s1 + $0x180] sm:$0xff]   ;;  %v998_v58 = vld [vmem:[%s1321_s1 + $0x128] sm:$0xff]  }
  0x14   :  { %864 = vmatprep.subr.bf16.mxu0 %v975_v20  ;;  %v40_v60 = vld [vmem:[%s1320_s0 + $0x60] sm:$0xff]  ;;  %v41_v63 = vld [vmem:[%s1320_s0 + $0x68] sm:$0xff] }
  0x15   :  { %885 = vmatpush3.bf16.msra.mxu1 %v974_v19  ;;  %v47_v61 = vpack.c.bf16 %v40_v60, %v33_v57  ;;  %v48_v0 = vpack.c.bf16 %v41_v63, %v34_v62 }
  0x16   :  { %886 = vmatprep.subr.bf16.mxu1 %v977_v22 }
  0x17   :  { %865 = vmatpush3.bf16.msra.mxu0 %v976_v21 }
  0x18   :  { %866 = vmatprep.subr.bf16.mxu0 %v979_v24 }
  0x19   :  { %887 = vmatpush3.bf16.msra.mxu1 %v978_v23 }
  0x1a   :  { %888 = vmatprep.subr.bf16.mxu1 %v981_v26 }
  0x1b   :  { %867 = vmatpush3.bf16.msra.mxu0 %v980_v25 }
  0x1c   :  { %868 = vmatprep.subr.bf16.mxu0 %v983_v28 }
  0x1d   :  { %889 = vmatpush3.bf16.msra.mxu1 %v982_v27 }
  0x1e   :  { %890 = vmatprep.subr.bf16.mxu1 %v985_v30 }
  0x1f   :  { %869 = vmatpush3.bf16.msra.mxu0 %v984_v29 }
  0x20   :  { %898 = vmatprep.subr.bf16.mxu0 %v987_v38 }
  0x21   :  { %891 = vmatpush3.bf16.msra.mxu1 %v986_v34 }
  0x22   :  { %928 = vmatprep.subr.bf16.mxu1 %v1040_v43  ;;  %485 = vmatmul.mubr.bf16.vlgmr.msra.gmra.mrb[0].mxu0 %v42_v37 }
  0x23   :  { %899 = vmatpush3.bf16.msra.mxu0 %v988_v42  ;;  %566 = vmatprep.mubr.bf16.mxu0 %v47_v61 }
  0x24   :  { %526 = vmatmul.mubr.bf16.vlgmr.msra.gmra.mrb[0].mxu1 %v44_v46  ;;  %900 = vmatprep.subr.bf16.mxu0 %v989_v47 }
  0x25   :  { %930 = vmatprep.mubr.msk.bf16.mxu1 %vm1041_vm0, %v1040_v43  ;;  %929 = vmatpush3.bf16.msra.mxu1 %v1003_v56 }
  0x26   :  { %934 = vmatprep.subr.bf16.mxu1 %v1040_v43 }
  0x27   :  { %901 = vmatpush3.bf16.msra.mxu0 %v990_v48 }
  0x28   :  { %902 = vmatprep.subr.bf16.mxu0 %v991_v49 }
  0x2b   :  { %903 = vmatpush3.bf16.msra.mxu0 %v992_v50 }
  0x2c   :  { %904 = vmatprep.subr.bf16.mxu0 %v993_v51  ;;  %931 = vmatmul.mubr.msk.bf16.vlgmr.msra.gmra.mrb[4].mxu1 %vm448_vm1, %v48_v0 }
  0x2f   :  { %905 = vmatpush3.bf16.msra.mxu0 %v994_v52 }
  0x30   :  { %906 = vmatprep.subr.bf16.mxu0 %v995_v53 }
  0x33   :  { %907 = vmatpush3.bf16.msra.mxu0 %v996_v54 }
  0x34   :  { %908 = vmatprep.subr.bf16.mxu0 %v997_v55 }
  0x35   :  { %12 = vsyncpa [#allocation3], 0  ;;  %v1000_v1 = vld [vmem:[%s1321_s1 + $0x130] sm:$0xff]   ;;  %938 = vmatprep.mubr.msk.bf16.mxu1 %vm1041_vm0, %v1040_v43  ;;  %v1001_v2 = vld [vmem:[%s1321_s1 + $0x178] sm:$0xff]   ;;  %vm642_vm2 = vcmask 261120  }
  0x36   :  { %v1002_v3 = vld [vmem:[%s1321_s1 + $0x138] sm:$0xff]   ;;  %v32_v4 = vld [vmem:[%s1320_s0 + $0x20] sm:$0xff]  ;;  %v1005_v8 = vld [vmem:[%s1323_s3 + $0x8] sm:$0xff]  }
  0x37   :  { %909 = vmatpush3.bf16.msra.mxu0 %v998_v58  ;;  %v39_v5 = vld [vmem:[%s1320_s0 + $0x58] sm:$0xff]  ;;  %v1004_v7 = vld [vmem:[%s1323_s3] sm:$0xff]   ;;  %v1007_v45 = vld [vmem:[%s1325_s5 + $0x8] sm:$0xff]  }
  0x38   :  { %910 = vmatprep.subr.bf16.mxu0 %v999_v59  ;;  %v46_v6 = vpack.c.bf16 %v39_v5, %v32_v4  ;;  %935 = vmatpush3.bf16.msra.mxu1 %v1004_v7  ;;  %v795_v10 = vld [vmem:[%s1322_s2] ss:$0 sm:$0xff] }
  0x39   :  { %936 = vmatprep.subr.bf16.mxu1 %v1040_v43  ;;  %v1006_v44 = vld [vmem:[%s1325_s5] sm:$0xff]  }
  0x3a   :  { %v846_v46 = vld [vmem:[%s1324_s4] ss:$0 sm:$0xff]  ;;  %s1042_s4 = smov [#allocation2]  }
  0x3b   :  { %911 = vmatpush3.bf16.msra.mxu0 %v1000_v1  ;;  %s784_s5 = sshll.u32 %s1042_s4, 4  ;;  %s785_s5 = int_to_ptr.vmem [resolvable:$true] %s784_s5 }
  0x3c   :  { %912 = vmatprep.subr.bf16.mxu0 %v1001_v2  ;;  %937 = vmatpush3.bf16.msra.mxu1 %v1005_v8  ;;  %p1021_p1 = scmp.lt.s32.totalorder %s785_s5, %s785_s5 }
  0x3d   :  { %942 = vmatprep.subr.bf16.mxu1 %v1040_v43 }
  0x3f   :  { %913 = vmatpush3.bf16.msra.mxu0 %v1002_v3 }
  0x42   :  { %567 = vmatmul.mubr.bf16.vlgmr.msra.gmra.mrb[4].mxu0 %v46_v6 }
  0xf5   :  { %v870_v9 = vpop.f32.mrb[0].mxu0 }
  0xf6   :  { %v871_v11 = vpop.f32.mrb[1].mxu0 }
  0xf7   :  { %v872_v12 = vadd.f32 %v871_v11, %v870_v9  ;;  %v873_v13 = vpop.f32.mrb[2].mxu0  ;;  %v892_v14 = vpop.f32.mrb[0].mxu1 }
  0xf8   :  { %v874_v15 = vpop.f32.mrb[3].mxu0  ;;  %v893_v18 = vpop.f32.mrb[1].mxu1 }
  0xf9   :  { %v487_v16 = vadd.f32 %v872_v12, %v795_v10  ;;  %v875_v17 = vadd.f32 %v874_v15, %v873_v13  ;;  %v894_v19 = vadd.f32 %v893_v18, %v892_v14  ;;  %v895_v20 = vpop.f32.mrb[2].mxu1 }
  0xfa   :  { %v896_v22 = vpop.f32.mrb[3].mxu1 }
  0xfb   :  { %v490_v21 = vadd.f32 %v875_v17, %v795_v10  ;;  %v528_v23 = vadd.f32 %v894_v19, %v487_v16  ;;  %v897_v24 = vadd.f32 %v896_v22, %v895_v20 }
  0xfd   :  { %v531_v25 = vadd.f32 %v897_v24, %v490_v21 }
  0xff   :  { %v609_v26 = vpop.f32.mrb[4].mxu1 }
 0x100   :  { %v932_v27 = vpop.f32.mrb[5].mxu1 }
 0x101   :  { %v612_v28 = vpop.f32.mrb[6].mxu1 }
 0x102   :  { %v933_v29 = vpop.f32.mrb[7].mxu1 }
 0x115   :  { %v914_v30 = vpop.f32.mrb[4].mxu0 }
 0x116   :  { %v915_v31 = vpop.f32.mrb[5].mxu0 }
 0x117   :  { %v916_v32 = vadd.f32 %v915_v31, %v914_v30  ;;  %v917_v33 = vpop.f32.mrb[6].mxu0 }
 0x118   :  { %v918_v34 = vpop.f32.mrb[7].mxu0 }
 0x119   :  { %v569_v35 = vadd.f32 %v916_v32, %v528_v23  ;;  %v919_v36 = vadd.f32 %v918_v34, %v917_v33 }
 0x11b   :  { %v610_v37 = vadd.f32 %v609_v26, %v569_v35  ;;  %v572_v38 = vadd.f32 %v919_v36, %v531_v25 }
 0x11d   :  { %v613_v39 = vadd.f32 %v612_v28, %v572_v38  ;;  %v616_v40 = vmax.f32 %v610_v37, 0.0 }
 0x11f   :  { %v617_v41 = vmax.f32 %v613_v39, 0.0 }
 0x121   :  { %v618_v42 = vpack.c.bf16 %v617_v41, %v616_v40 }
 0x123   :  { %939 = vmatmul.mubr.msk.bf16.vlgmr.msra.gmra.mrb[8].mxu1 %vm642_vm2, %v618_v42 }
 0x124   :  { %946 = vmatprep.mubr.msk.bf16.mxu1 %vm1041_vm0, %v1040_v43  ;;  %943 = vmatpush3.bf16.msra.mxu1 %v1006_v44 }
 0x125   :  { %944 = vmatprep.subr.bf16.mxu1 %v1040_v43  ;;  %v850_v43 = vld [vmem:[%s1326_s6] ss:$0 sm:$0xff]  ;;  %s1016_s6 = scalar_lea.vmem %s785_s5, 256 }
 0x126   :  { %p1017_p0 = scmp.ne.s32.totalorder %s785_s5, %s1016_s6  ;;  %p1022_p2 = scmp.lt.s32.totalorder %s1016_s6, %s1016_s6 }
 0x128   :  { %945 = vmatpush3.bf16.msra.mxu1 %v1007_v45  ;;  %p1023_p3 = por %p1022_p2, %p1021_p1 }
 0x12a   :  { %p1024_p4 = pnand %p1023_p3, %p1017_p0 }
 0x1f6   :  { %v680_v47 = vpop.f32.mrb[8].mxu1 }
 0x1f7   :  { %v681_v48 = vadd.f32 %v846_v46, %v680_v47  ;;  %v940_v49 = vpop.f32.mrb[9].mxu1 }
 0x1f8   :  { %v683_v50 = vpop.f32.mrb[10].mxu1 }
 0x1f9   :  { %v684_v51 = vadd.f32 %v846_v46, %v683_v50  ;;  %v941_v52 = vpop.f32.mrb[11].mxu1  ;;  %v687_v53 = vmax.f32 %v681_v48, 0.0 }
 0x1fb   :  { %v688_v54 = vmax.f32 %v684_v51, 0.0 }
 0x1fd   :  { %v689_v55 = vpack.c.bf16 %v688_v54, %v687_v53 }
 0x1ff   :  { %947 = vmatmul.mubr.msk.bf16.vlgmr.msra.gmra.mrb[12].mxu1 %vm642_vm2, %v689_v55 }
 0x2d2   :  { %v750_v56 = vpop.f32.mrb[12].mxu1 }
 0x2d3   :  { %v751_v57 = vadd.f32 %v850_v43, %v750_v56  ;;  %v948_v58 = vpop.f32.mrb[13].mxu1 }
 0x2d4   :  { %v753_v59 = vpop.f32.mrb[14].mxu1 }
 0x2d5   :  { %757 = vmax.xlane.f32.xlu0 %v751_v57  ;;  %v949_v60 = vpop.f32.mrb[15].mxu1  ;;  %v754_v61 = vadd.f32 %v850_v43, %v753_v59 }
 0x2d9   :  { %759 = vmax.xlane.f32.xlu0 %v754_v61 }
 0x362   :  { %v758_v62 = vpop.xlane.xlu0 %757 }
 0x363   :  { %v761_v63 = vsub.f32 %v751_v57, %v758_v62 }
 0x365   :  { %v763_v0 = vmul.f32 1.442695, %v761_v63 }
 0x366   :  { %v760_v1 = vpop.xlane.xlu0 %759 }
 0x367   :  { %v762_v2 = vsub.f32 %v754_v61, %v760_v1  ;;  %1008 = vpow2.f32 %v763_v0 }
 0x369   :  { %v765_v3 = vmul.f32 1.442695, %v762_v2 }
 0x36b   :  { %1010 = vpow2.f32 %v765_v3 }
 0x371   :  { %v1009_v4 = vpop.eup %1008 }
 0x372   :  { %767 = vadd.xlane.f32.xlu1 %v1009_v4 }
 0x375   :  { %v1011_v5 = vpop.eup %1010 }
 0x376   :  { %769 = vadd.xlane.f32.xlu1 %v1011_v5 }
 0x3ff   :  { %v768_v6 = vpop.xlane.xlu1 %767 }
 0x400   :  { %1012 = vlog2.f32 %v768_v6 }
 0x403   :  { %v770_v7 = vpop.xlane.xlu1 %769 }
 0x404   :  { %1014 = vlog2.f32 %v770_v7 }
 0x40a   :  { %v1013_v8 = vpop.eup %1012 }
 0x40b   :  { %v772_v9 = vmul.f32 0.6931472, %v1013_v8 }
 0x40d   :  { %v775_v10 = vsub.f32 %v761_v63, %v772_v9 }
 0x40e   :  { %v1015_v11 = vpop.eup %1014 }
 0x40f   :  { %777 = vst [vmem:[#allocation2] sm:$0xff] %v775_v10  ;;  %v774_v12 = vmul.f32 0.6931472, %v1015_v11 }
 0x411   :  { %v776_v13 = vsub.f32 %v762_v2, %v774_v12 }
 0x413   :  { %778 = vst [vmem:[#allocation2 + $0x8] sm:$0xff] %v776_v13 }
 0x414   :  { %1027 = shalt.err (!%p1024_p4)
}
 0x415   :  { %s1028_s24 = scalar_lea.hbm %s1327_s7, 256 }
 0x416   :  { %p1029_p5 = scmp.ne.s32.totalorder %s1327_s7, %s1028_s24  ;;  %p1032_p6 = scmp.lt.u32.totalorder %s1028_s24, %s1327_s7 }
 0x418   :  { %p1034_p7 = pnand %p1032_p6, %p1029_p5 }
 0x41a   :  { %1037 = shalt.err (!%p1034_p7)
}
 0x41b   :  { %s1043_s29 = smov 128   ;;  %s1044_s30 = smov 8  }
 0x41c   :  { %790 = dma.vmem_to_hbm [thread:$0]  %s785_s5, 256, %s1327_s7, [#allocation3], %s1043_s29, %s1043_s29, %s1044_s30  }
 0x41d   :  { %1038 = dma.done.wait [#allocation3], 256  }
 0x41e   :  { %1039 = vsyncadd [#allocation3], 4294967040 }
 0x41f   :  { %794 = vsyncpa [#allocation3], 1 }

</bundles_post_ra>
